<compile_context>
chip_gen: v5e
topology: v5e:2x2
jax: 0.10.0
libtpu: 0.0.40
codegen_flags: <defaults>
</compile_context>

<pallas_src>
import jax
import jax.numpy as jnp
from jax.experimental import pallas as pl
from jax.experimental.pallas import tpu as pltpu


# ----------------------------------------------------------------------------
# Kernels
# ----------------------------------------------------------------------------

def _make_fused_kernel(num_actions):
    """Single-block kernel: full MLP + softmax over dim 0 (batch axis).

    The block covers the entire batch, so the column-wise (per-action) softmax
    reduction over dim 0 can be done in-kernel; writes final probabilities.
    """

    def kernel(x_ref, w1_ref, b1_ref, w2_ref, b2_ref, w3_ref, b3_ref, out_ref):
        # Cast x to bf16 in-kernel (no separate XLA cast op, x read from HBM once).
        x = x_ref[...].astype(jnp.bfloat16)
        h1 = jnp.dot(x, w1_ref[...],
                     preferred_element_type=jnp.float32) + b1_ref[...]
        h1 = jnp.maximum(h1, 0.0)
        h2 = jnp.dot(h1.astype(jnp.bfloat16), w2_ref[...],
                     preferred_element_type=jnp.float32) + b2_ref[...]
        h2 = jnp.maximum(h2, 0.0)
        logits = jnp.dot(h2.astype(jnp.bfloat16), w3_ref[...],
                         preferred_element_type=jnp.float32) + b3_ref[...]
        # softmax over dim 0 (batch axis), matching torch.softmax(x, dim=0).
        # Block == full batch -> no padded rows -> no -inf masking required.
        m = jnp.max(logits, axis=0, keepdims=True)
        e = jnp.exp(logits - m)
        denom = jnp.sum(e, axis=0, keepdims=True)
        probs = e * pl.reciprocal(denom, approx=True)      # EUP slot, ~free
        # Write only the real action columns (drops the lane padding), so the
        # wrapper needs no slice op at all.
        out_ref[...] = probs[:, :num_actions]

    return kernel


def _logits_kernel(x_ref, w1_ref, b1_ref, w2_ref, b2_ref, w3_ref, b3_ref,
                   out_ref):
    """Multi-block kernel: one batch tile -> lane-dense f32 logits."""
    x = x_ref[...].astype(jnp.bfloat16)
    h1 = jnp.maximum(
        jnp.dot(x, w1_ref[...], preferred_element_type=jnp.float32)
        + b1_ref[...], 0.0)
    h2 = jnp.maximum(
        jnp.dot(h1.astype(jnp.bfloat16), w2_ref[...],
                preferred_element_type=jnp.float32) + b2_ref[...], 0.0)
    out_ref[...] = jnp.dot(h2.astype(jnp.bfloat16), w3_ref[...],
                           preferred_element_type=jnp.float32) + b3_ref[...]


# ----------------------------------------------------------------------------
# Wrapper
# ----------------------------------------------------------------------------

_FUSE_MAX_BATCH = 128   # whole batch in one block -> fuse the dim-0 softmax


def _round_up(x, m):
    return (x + m - 1) // m * m


def _tpu_kind():
    try:
        return jax.devices()[0].device_kind.lower()
    except Exception:
        return ""


def _pick_batch_tile(batch, kind):
    """Batch tile for the multi-block (batch > _FUSE_MAX_BATCH) path."""
    if "v7" in kind or "7x" in kind:
        if batch >= 512:
            return 256                              # each TC gets >=1 full 256-row block
        # Guarantee >= 2 grid blocks so the "parallel" axis actually shards
        # across the two v7x TensorCores.
        return min(256, max(16, _round_up(-(-batch // 2), 16)))
    if "v6" in kind and batch >= 256:
        return 256                                  # v6e MXU is 2x256x256
    return 128                                      # v5e MXU is 4x128x128


def prepare_params(params):
    """One-time parameter preprocessing (do NOT call per forward pass).

    Casts weights to bf16 (MXU operands), biases to f32, and zero-pads the
    hidden width and action width up to multiples of 128 lanes.
    """
    w1, b1, w2, b2, w3, b3 = params
    s2, h2 = w1.shape
    a = w3.shape[1]
    h2p = _round_up(h2, 128)
    ap = _round_up(a, 128)

    w1p = jnp.pad(w1, ((0, 0), (0, h2p - h2))).astype(jnp.bfloat16)
    b1p = jnp.pad(b1.reshape(1, -1), ((0, 0), (0, h2p - h2))).astype(jnp.float32)
    w2p = jnp.pad(w2, ((0, h2p - h2), (0, h2p - h2))).astype(jnp.bfloat16)
    b2p = jnp.pad(b2.reshape(1, -1), ((0, 0), (0, h2p - h2))).astype(jnp.float32)
    w3p = jnp.pad(w3, ((0, h2p - h2), (0, ap - a))).astype(jnp.bfloat16)
    b3p = jnp.pad(b3.reshape(1, -1), ((0, 0), (0, ap - a))).astype(jnp.float32)
    return (w1p, b1p, w2p, b2p, w3p, b3p)


def mlp_backward_policy(s, prepared, num_actions):
    """s: (B, state_dim, state_dim).  Returns softmax over dim=0, (B, num_actions) f32."""
    w1, b1, w2, b2, w3, b3 = prepared
    batch = s.shape[0]
    s2, h2p = w1.shape
    ap = w3.shape[1]
    a = num_actions

    # Contiguous reshape (+ no-op cast when already f32): essentially free.
    x = s.reshape(batch, -1).astype(jnp.float32)
    assert x.shape[1] == s2, "state_dim**2 mismatch between input and params"

    kind = _tpu_kind()

    # Weights/biases are VMEM-resident across the batch grid (constant index_map).
    weight_specs = [
        pl.BlockSpec((s2, h2p), lambda i: (0, 0)),    # w1
        pl.BlockSpec((1, h2p), lambda i: (0, 0)),     # b1
        pl.BlockSpec((h2p, h2p), lambda i: (0, 0)),   # w2
        pl.BlockSpec((1, h2p), lambda i: (0, 0)),     # b2
        pl.BlockSpec((h2p, ap), lambda i: (0, 0)),    # w3 (lane-padded)
        pl.BlockSpec((1, ap), lambda i: (0, 0)),      # b3 (lane-padded)
    ]

    if batch <= _FUSE_MAX_BATCH:
        # Full-dim batch block (always layout-legal, no padded rows, no row
        # masking).  At batch < 16 this under-fills packed bf16 vregs slightly,
        # but the kernel is launch-bound there so it is irrelevant.
        tb = batch
        num_blocks = 1
    else:
        tb = _pick_batch_tile(batch, kind)
        num_blocks = pl.cdiv(batch, tb)

    # Scoped-VMEM budget: double-buffered weights + streamed x/out tiles + headroom.
    weight_bytes = sum(int(t.size) * t.dtype.itemsize
                       for t in (w1, b1, w2, b2, w3, b3))
    out_cols = a if num_blocks == 1 else ap
    stream_bytes = 2 * tb * s2 * 4 + 2 * tb * out_cols * 4
    vmem_limit = min(128 * 1024 * 1024,
                     max(32 * 1024 * 1024,
                         2 * weight_bytes + stream_bytes + (8 << 20)))

    compiler_params = pltpu.CompilerParams(
        dimension_semantics=("parallel",),
        vmem_limit_bytes=int(vmem_limit),
    )

    if num_blocks == 1:
        # Fused path: one Pallas launch produces the final probabilities.
        return pl.pallas_call(
            _make_fused_kernel(a),
            out_shape=jax.ShapeDtypeStruct((batch, a), jnp.float32),
            grid=(1,),
            in_specs=[pl.BlockSpec((tb, s2), lambda i: (i, 0))] + weight_specs,
            out_specs=pl.BlockSpec((tb, a), lambda i: (i, 0)),
            compiler_params=compiler_params,
        )(x, w1, b1, w2, b2, w3, b3)

    # Multi-block path: lane-dense logits from the kernel; the dim-0 softmax
    # couples rows across blocks, so it runs in XLA on the tiny (B, A) slab.
    # The output has exactly `batch` rows, so no padded rows enter the softmax.
    logits = pl.pallas_call(
        _logits_kernel,
        out_shape=jax.ShapeDtypeStruct((batch, ap), jnp.float32),
        grid=(num_blocks,),
        in_specs=[pl.BlockSpec((tb, s2), lambda i: (i, 0))] + weight_specs,
        out_specs=pl.BlockSpec((tb, ap), lambda i: (i, 0)),
        compiler_params=compiler_params,
    )(x, w1, b1, w2, b2, w3, b3)
    return jax.nn.softmax(logits[:, :a], axis=0)


# ----------------------------------------------------------------------------
# Parameter init (nn.Linear-style) and references
# ----------------------------------------------------------------------------

def init_params(key, state_dim, hidden_dim, num_actions):
    """nn.Linear default init; weights stored transposed (in_features, out_features)."""
    s2 = state_dim * state_dim
    h2 = hidden_dim * hidden_dim
    keys = jax.random.split(key, 6)

    def linear(kw, kb, fan_in, fan_out):
        bound = 1.0 / (fan_in ** 0.5)
        w = jax.random.uniform(kw, (fan_in, fan_out), jnp.float32, -bound, bound)
        b = jax.random.uniform(kb, (fan_out,), jnp.float32, -bound, bound)
        return w, b

    w1, b1 = linear(keys[0], keys[1], s2, h2)
    w2, b2 = linear(keys[2], keys[3], h2, h2)
    w3, b3 = linear(keys[4], keys[5], h2, num_actions)
    return (w1, b1, w2, b2, w3, b3)


def _reference_bf16(s, params):
    """Reference with matching bf16-operand / f32-accumulation precision."""
    w1, b1, w2, b2, w3, b3 = params
    x = s.reshape(s.shape[0], -1).astype(jnp.bfloat16)
    h1 = jnp.maximum(jnp.dot(x, w1.astype(jnp.bfloat16),
                             preferred_element_type=jnp.float32) + b1, 0.0)
    h2 = jnp.maximum(jnp.dot(h1.astype(jnp.bfloat16), w2.astype(jnp.bfloat16),
                             preferred_element_type=jnp.float32) + b2, 0.0)
    logits = jnp.dot(h2.astype(jnp.bfloat16), w3.astype(jnp.bfloat16),
                     preferred_element_type=jnp.float32) + b3
    return jax.nn.softmax(logits, axis=0)


def _reference_f32(s, params):
    """Full-f32 reference of the original PyTorch semantics."""
    w1, b1, w2, b2, w3, b3 = params
    x = s.reshape(s.shape[0], -1).astype(jnp.float32)
    h1 = jnp.maximum(x @ w1 + b1, 0.0)
    h2 = jnp.maximum(h1 @ w2 + b2, 0.0)
    logits = h2 @ w3 + b3
    return jax.nn.softmax(logits, axis=0)


# ----------------------------------------------------------------------------
# Main
# ----------------------------------------------------------------------------

if __name__ == "__main__":
    state_dim = 8      # flattened state = 64
    hidden_dim = 8     # hidden width = 64 (padded to 128 lanes in prepare_params)
    num_actions = 16
    batch_size = 8

    key = jax.random.PRNGKey(0)
    k_params, k_input = jax.random.split(key)

    params = init_params(k_params, state_dim, hidden_dim, num_actions)
    prepared = prepare_params(params)          # one-time; NOT in the per-call path
    s = jax.random.normal(k_input, (batch_size, state_dim, state_dim), jnp.float32)

    forward = jax.jit(mlp_backward_policy, static_argnums=(2,))
    out = jax.block_until_ready(forward(s, prepared, num_actions))

    assert out.shape == (batch_size, num_actions)
    assert bool(jnp.all(jnp.isfinite(out)))
    # Columns of softmax(dim=0) sum to ~1 (small slack for the EUP approx reciprocal).
    assert jnp.allclose(jnp.sum(out, axis=0), 1.0, atol=2e-2)

    # Matching-precision (bf16 operand / f32 accum) reference: tight agreement,
    # slack covers the approximate reciprocal and reduce ordering.
    ref_bf16 = _reference_bf16(s, params)
    assert jnp.allclose(out, ref_bf16, atol=5e-3, rtol=2e-2), "mismatch vs bf16 reference"

    # Full-f32 reference of the PyTorch module: loose tolerance covers bf16 MXU operands.
    ref_f32 = _reference_f32(s, params)
    assert jnp.allclose(out, ref_f32, atol=5e-2, rtol=5e-2), "mismatch vs f32 reference"

    print("KERNEL_OK")
</pallas_src>

<mosaic_0001>
module attributes {stable_mosaic.version = 11 : i64} {
  func.func @kernel(%arg0: i32, %arg1: memref<8x64xf32, #tpu.memory_space<vmem>>, %arg2: memref<64x128xbf16, #tpu.memory_space<vmem>>, %arg3: memref<1x128xf32, #tpu.memory_space<vmem>>, %arg4: memref<128x128xbf16, #tpu.memory_space<vmem>>, %arg5: memref<1x128xf32, #tpu.memory_space<vmem>>, %arg6: memref<128x128xbf16, #tpu.memory_space<vmem>>, %arg7: memref<1x128xf32, #tpu.memory_space<vmem>>, %arg8: memref<8x16xf32, #tpu.memory_space<vmem>>) attributes {dimension_semantics = [#tpu.dimension_semantics<parallel>], iteration_bounds = array<i64: 1>, scalar_prefetch = 0 : i64, scratch_operands = 0 : i64, tpu.core_type = #tpu.core_type<tc>, window_params = [{transform_indices = @transform_0, window_bounds = array<i64: 8, 64>}, {pipeline_mode = #tpu.pipeline_mode<synchronous>, transform_indices = @transform_1, window_bounds = array<i64: 64, 128>}, {pipeline_mode = #tpu.pipeline_mode<synchronous>, transform_indices = @transform_2, window_bounds = array<i64: 1, 128>}, {pipeline_mode = #tpu.pipeline_mode<synchronous>, transform_indices = @transform_3, window_bounds = array<i64: 128, 128>}, {pipeline_mode = #tpu.pipeline_mode<synchronous>, transform_indices = @transform_4, window_bounds = array<i64: 1, 128>}, {pipeline_mode = #tpu.pipeline_mode<synchronous>, transform_indices = @transform_5, window_bounds = array<i64: 128, 128>}, {pipeline_mode = #tpu.pipeline_mode<synchronous>, transform_indices = @transform_6, window_bounds = array<i64: 1, 128>}, {transform_indices = @transform_7, window_bounds = array<i64: 8, 16>}]} {
    %c0 = arith.constant 0 : index
    %c0_0 = arith.constant 0 : index
    %0 = vector.load %arg1[%c0, %c0_0] : memref<8x64xf32, #tpu.memory_space<vmem>>, vector<8x64xf32>
    %1 = arith.truncf %0 : vector<8x64xf32> to vector<8x64xbf16>
    %c0_1 = arith.constant 0 : index
    %c0_2 = arith.constant 0 : index
    %2 = vector.load %arg2[%c0_1, %c0_2] : memref<64x128xbf16, #tpu.memory_space<vmem>>, vector<64x128xbf16>
    %cst = arith.constant dense<0.000000e+00> : vector<8x128xf32>
    %3 = tpu.matmul %1, %2, %cst {dimension_numbers = #tpu.dot_dimension_numbers<[1], [0], [0], [1], [0, 0, 1, 1], [], []>} : vector<8x64xbf16>, vector<64x128xbf16>, vector<8x128xf32> -> vector<8x128xf32>
    %c0_3 = arith.constant 0 : index
    %c0_4 = arith.constant 0 : index
    %4 = vector.load %arg3[%c0_3, %c0_4] : memref<1x128xf32, #tpu.memory_space<vmem>>, vector<1x128xf32>
    %5 = vector.broadcast %4 : vector<1x128xf32> to vector<8x128xf32>
    %6 = arith.addf %3, %5 : vector<8x128xf32>
    %cst_5 = arith.constant 0.000000e+00 : f32
    %7 = vector.broadcast %cst_5 : f32 to vector<8x128xf32>
    %8 = arith.maximumf %6, %7 : vector<8x128xf32>
    %9 = arith.truncf %8 : vector<8x128xf32> to vector<8x128xbf16>
    %c0_6 = arith.constant 0 : index
    %c0_7 = arith.constant 0 : index
    %10 = vector.load %arg4[%c0_6, %c0_7] : memref<128x128xbf16, #tpu.memory_space<vmem>>, vector<128x128xbf16>
    %cst_8 = arith.constant dense<0.000000e+00> : vector<8x128xf32>
    %11 = tpu.matmul %9, %10, %cst_8 {dimension_numbers = #tpu.dot_dimension_numbers<[1], [0], [0], [1], [0, 0, 1, 1], [], []>} : vector<8x128xbf16>, vector<128x128xbf16>, vector<8x128xf32> -> vector<8x128xf32>
    %c0_9 = arith.constant 0 : index
    %c0_10 = arith.constant 0 : index
    %12 = vector.load %arg5[%c0_9, %c0_10] : memref<1x128xf32, #tpu.memory_space<vmem>>, vector<1x128xf32>
    %13 = vector.broadcast %12 : vector<1x128xf32> to vector<8x128xf32>
    %14 = arith.addf %11, %13 : vector<8x128xf32>
    %cst_11 = arith.constant 0.000000e+00 : f32
    %15 = vector.broadcast %cst_11 : f32 to vector<8x128xf32>
    %16 = arith.maximumf %14, %15 : vector<8x128xf32>
    %17 = arith.truncf %16 : vector<8x128xf32> to vector<8x128xbf16>
    %c0_12 = arith.constant 0 : index
    %c0_13 = arith.constant 0 : index
    %18 = vector.load %arg6[%c0_12, %c0_13] : memref<128x128xbf16, #tpu.memory_space<vmem>>, vector<128x128xbf16>
    %cst_14 = arith.constant dense<0.000000e+00> : vector<8x128xf32>
    %19 = tpu.matmul %17, %18, %cst_14 {dimension_numbers = #tpu.dot_dimension_numbers<[1], [0], [0], [1], [0, 0, 1, 1], [], []>} : vector<8x128xbf16>, vector<128x128xbf16>, vector<8x128xf32> -> vector<8x128xf32>
    %c0_15 = arith.constant 0 : index
    %c0_16 = arith.constant 0 : index
    %20 = vector.load %arg7[%c0_15, %c0_16] : memref<1x128xf32, #tpu.memory_space<vmem>>, vector<1x128xf32>
    %21 = vector.broadcast %20 : vector<1x128xf32> to vector<8x128xf32>
    %22 = arith.addf %19, %21 : vector<8x128xf32>
    %cst_17 = arith.constant dense<0xFF800000> : vector<128xf32>
    %23 = vector.multi_reduction <maximumf>, %22, %cst_17 [0] : vector<8x128xf32> to vector<128xf32>
    %24 = vector.shape_cast %23 : vector<128xf32> to vector<1x128xf32>
    %25 = vector.broadcast %24 : vector<1x128xf32> to vector<8x128xf32>
    %26 = arith.subf %22, %25 : vector<8x128xf32>
    %27 = math.exp %26 : vector<8x128xf32>
    %cst_18 = arith.constant dense<0.000000e+00> : vector<128xf32>
    %28 = vector.multi_reduction <add>, %27, %cst_18 [0] : vector<8x128xf32> to vector<128xf32>
    %29 = vector.shape_cast %28 : vector<128xf32> to vector<1x128xf32>
    %30 = tpu.reciprocal %29 {approx = true} : vector<1x128xf32> -> vector<1x128xf32>
    %31 = vector.broadcast %30 : vector<1x128xf32> to vector<8x128xf32>
    %32 = arith.mulf %27, %31 : vector<8x128xf32>
    %33 = vector.extract_strided_slice %32 {offsets = [0, 0], sizes = [8, 16], strides = [1, 1]} : vector<8x128xf32> to vector<8x16xf32>
    %c0_19 = arith.constant 0 : index
    %c0_20 = arith.constant 0 : index
    %34 = vector.load %arg8[%c0_19, %c0_20] : memref<8x16xf32, #tpu.memory_space<vmem>>, vector<8x16xf32>
    tpu.vector_store %arg8[%c0_19, %c0_20], %33 {strides = array<i32>} : memref<8x16xf32, #tpu.memory_space<vmem>>, vector<8x16xf32>,
    return
  }
  func.func @transform_0(%arg0: i32) -> (i32, i32) {
    %c0_i32 = arith.constant 0 : i32
    %c0_i32_0 = arith.constant 0 : i32
    return %arg0, %c0_i32 : i32, i32
  }
  func.func @transform_1(%arg0: i32) -> (i32, i32) {
    %c0_i32 = arith.constant 0 : i32
    %c0_i32_0 = arith.constant 0 : i32
    %c0_i32_1 = arith.constant 0 : i32
    return %c0_i32, %c0_i32_0 : i32, i32
  }
  func.func @transform_2(%arg0: i32) -> (i32, i32) {
    %c0_i32 = arith.constant 0 : i32
    %c0_i32_0 = arith.constant 0 : i32
    %c0_i32_1 = arith.constant 0 : i32
    return %c0_i32, %c0_i32_0 : i32, i32
  }
  func.func @transform_3(%arg0: i32) -> (i32, i32) {
    %c0_i32 = arith.constant 0 : i32
    %c0_i32_0 = arith.constant 0 : i32
    %c0_i32_1 = arith.constant 0 : i32
    return %c0_i32, %c0_i32_0 : i32, i32
  }
  func.func @transform_4(%arg0: i32) -> (i32, i32) {
    %c0_i32 = arith.constant 0 : i32
    %c0_i32_0 = arith.constant 0 : i32
    %c0_i32_1 = arith.constant 0 : i32
    return %c0_i32, %c0_i32_0 : i32, i32
  }
  func.func @transform_5(%arg0: i32) -> (i32, i32) {
    %c0_i32 = arith.constant 0 : i32
    %c0_i32_0 = arith.constant 0 : i32
    %c0_i32_1 = arith.constant 0 : i32
    return %c0_i32, %c0_i32_0 : i32, i32
  }
  func.func @transform_6(%arg0: i32) -> (i32, i32) {
    %c0_i32 = arith.constant 0 : i32
    %c0_i32_0 = arith.constant 0 : i32
    %c0_i32_1 = arith.constant 0 : i32
    return %c0_i32, %c0_i32_0 : i32, i32
  }
  func.func @transform_7(%arg0: i32) -> (i32, i32) {
    %c0_i32 = arith.constant 0 : i32
    %c0_i32_0 = arith.constant 0 : i32
    return %arg0, %c0_i32 : i32, i32
  }
}

</mosaic_0001>

<bundles_post_ra>
// kernel: mlp_backward_policy.1
= control target key start
LH: loop header
LB: loop body
LE: loop exit
PB: predicated region body
PF: predicated region fallthrough
CT: control target
= control target key end

     0   :  { %12 = vsyncpa [#allocation3], 0  ;;  %s599_s0 = inlined_call_operand.vmem [shape: f32[8,64], index: 0, kind: input, shape index: {}]   ;;  %s600_s1 = inlined_call_operand.hbm [shape: bf16[64,128], index: 1, kind: input, shape index: {}]   ;;  %s601_s2 = inlined_call_operand.vmem [shape: f32[1,128], index: 2, kind: input, shape index: {}]   ;;  %s602_s3 = inlined_call_operand.vmem [shape: bf16[128,128], index: 3, kind: input, shape index: {}]   ;;  %s603_s4 = inlined_call_operand.vmem [shape: f32[1,128], index: 4, kind: input, shape index: {}]   ;;  %s604_s5 = inlined_call_operand.hbm [shape: bf16[128,128], index: 5, kind: input, shape index: {}]   ;;  %s605_s6 = inlined_call_operand.vmem [shape: f32[1,128], index: 6, kind: input, shape index: {}]   ;;  %s606_s7 = inlined_call_operand.hbm [shape: f32[8,16], index: 7, kind: output, shape index: {}]  }
   0x1   :  { %13 = vsyncpa [#allocation6], 0 }
   0x2   :  { %14 = vsyncpa [#allocation4], 0  ;;  %s21_s26 = sshll.u32 %s600_s1, 4  ;;  %s509_s27 = smov [#allocation2]   ;;  %s22_s26 = int_to_ptr.hbm [resolvable:$true] %s21_s26 }
   0x3   :  { %s23_s28 = sshll.u32 %s509_s27, 4  ;;  %s40_s8 = sshll.u32 %s604_s5, 4  ;;  %s24_s28 = int_to_ptr.vmem [resolvable:$true] %s23_s28  ;;  %s41_s8 = int_to_ptr.hbm [resolvable:$true] %s40_s8 }
   0x4   :  { %s510_s9 = smov 64   ;;  %s511_s10 = smov 4  }
   0x5   :  { %29 = dma.hbm_to_vmem [thread:$0]  %s22_s26, 512, %s24_s28, [#allocation3], %s510_s9, %s510_s9, %s511_s10  }
   0x6   :  { %s512_s11 = smov [#allocation5]  }
   0x7   :  { %s42_s12 = sshll.u32 %s512_s11, 4  ;;  %s43_s12 = int_to_ptr.vmem [resolvable:$true] %s42_s12 }
   0x8   :  { %48 = dma.hbm_to_vmem [thread:$0]  %s41_s8, 1024, %s43_s12, [#allocation6], %s510_s9, %s510_s9, %s511_s10  }
   0x9   :  { %503 = dma.done.wait [#allocation3], 512  }
   0xa   :  { %504 = vsyncadd [#allocation3], 4294966784 }
   0xb   :  { %505 = dma.done.wait [#allocation6], 1024  }
   0xc   :  { %506 = vsyncadd [#allocation6], 4294966272  ;;  %v402_v0 = vld [vmem:[#allocation2 + $0x18] sm:$0xff]  ;;  %v401_v2 = vld [vmem:[#allocation2 + $0x10] sm:$0xff]  ;;  %vm98_vm0 = vcmask 523264   ;;  %s307_s11 = sshll.u32 %s606_s7, 4  ;;  %s308_s11 = int_to_ptr.hbm [resolvable:$true] %s307_s11 }
   0xd   :  { %v410_v1 = vld [vmem:[%s602_s3 + $0x38] sm:$0xff]  ;;  %106 = vmatpush.bf16.msra.mxu0 %v402_v0  ;;  %v409_v3 = vld [vmem:[%s602_s3 + $0x30] sm:$0xff]  ;;  %v400_v4 = vld [vmem:[#allocation2 + $0x8] sm:$0xff]  ;;  %vm298_vm1 = vcmask 130048  }
   0xe   :  { %185 = vmatpush.bf16.msra.mxu1 %v410_v1  ;;  %v408_v5 = vld [vmem:[%s602_s3 + $0x28] sm:$0xff]  ;;  %v399_v6 = vld [vmem:[#allocation2] sm:$0xff]  ;;  %v406_v10 = vld [vmem:[%s602_s3 + $0x18] sm:$0xff] }
   0xf   :  { %v60_v7 = vld [vmem:[%s599_s0] sm:$0xff]  ;;  %v405_v11 = vld [vmem:[%s602_s3 + $0x10] sm:$0xff]  ;;  %v404_v12 = vld [vmem:[%s602_s3 + $0x8] sm:$0xff] }
  0x10   :  { %v407_v8 = vld [vmem:[%s602_s3 + $0x20] sm:$0xff]  ;;  %v61_v9 = vpack.c.bf16 %v60_v7, %v60_v7  ;;  %v418_v14 = vld [vmem:[#allocation5 + $0x38] sm:$0xff]  ;;  %v417_v15 = vld [vmem:[#allocation5 + $0x30] sm:$0xff] }
  0x11   :  { %107 = vmatpush.bf16.msra.mxu0 %v401_v2  ;;  %v403_v13 = vld [vmem:[%s602_s3] sm:$0xff]  ;;  %268 = vmatpush.bf16.msra.mxu2 %v418_v14  ;;  %v416_v16 = vld [vmem:[#allocation5 + $0x28] sm:$0xff]  ;;  %v414_v18 = vld [vmem:[#allocation5 + $0x18] sm:$0xff] }
  0x12   :  { %186 = vmatpush.bf16.msra.mxu1 %v409_v3  ;;  %v415_v17 = vld [vmem:[#allocation5 + $0x20] sm:$0xff]  ;;  %v413_v19 = vld [vmem:[#allocation5 + $0x10] sm:$0xff]  ;;  %v412_v26 = vld [vmem:[#allocation5 + $0x8] sm:$0xff] }
  0x13   :  { %v424_v20 = vld [vmem:[%s601_s2] ss:$0 sm:$0xff] }
  0x14   :  { %v411_v27 = vld [vmem:[#allocation5] sm:$0xff] }
  0x15   :  { %108 = vmatpush.bf16.msra.mxu0 %v400_v4  ;;  %269 = vmatpush.bf16.msra.mxu2 %v417_v15  ;;  %v425_v28 = vld [vmem:[%s603_s4] ss:$0 sm:$0xff]  ;;  %s513_s4 = smov [#allocation7]  }
  0x16   :  { %187 = vmatpush.bf16.msra.mxu1 %v408_v5  ;;  %v426_v34 = vld [vmem:[%s605_s6] ss:$0 sm:$0xff]  ;;  %s305_s6 = sshll.u32 %s513_s4, 4  ;;  %s306_s6 = int_to_ptr.vmem [resolvable:$true] %s305_s6 }
  0x19   :  { %109 = vmatpush.bf16.msra.mxu0 %v399_v6  ;;  %270 = vmatpush.bf16.msra.mxu2 %v416_v16 }
  0x1a   :  { %188 = vmatpush.bf16.msra.mxu1 %v407_v8 }
  0x1c   :  { %334 = vmatmul.msk.bf16.vlgmr.msra.gmra.mxu0 %vm98_vm0, %v61_v9 }
  0x1d   :  { %271 = vmatpush.bf16.msra.mxu2 %v415_v17 }
  0x1e   :  { %189 = vmatpush.bf16.msra.mxu1 %v406_v10 }
  0x21   :  { %272 = vmatpush.bf16.msra.mxu2 %v414_v18 }
  0x22   :  { %190 = vmatpush.bf16.msra.mxu1 %v405_v11 }
  0x25   :  { %273 = vmatpush.bf16.msra.mxu2 %v413_v19 }
  0x26   :  { %191 = vmatpush.bf16.msra.mxu1 %v404_v12 }
  0x29   :  { %274 = vmatpush.bf16.msra.mxu2 %v412_v26 }
  0x2a   :  { %192 = vmatpush.bf16.msra.mxu1 %v403_v13 }
  0x2d   :  { %275 = vmatpush.bf16.msra.mxu2 %v411_v27 }
  0x99   :  { %v111_v21 = vpop.f32.mrf.mxu0 }
  0x9a   :  { %v112_v22 = vadd.f32 %v424_v20, %v111_v21 }
  0x9c   :  { %v115_v23 = vmax.f32 %v112_v22, 0.0 }
  0x9e   :  { %v116_v24 = vpack.c.bf16 %v115_v23, %v115_v23 }
  0xa0   :  { %193 = vmatmul.bf16.vlgmr.msra.gmra.mxu1 %v116_v24 }
  0xa1   :  { %v113_v25 = vpop.f32.mrf.mxu0 }
 0x11d   :  { %v194_v29 = vpop.f32.mrf.mxu1 }
 0x11e   :  { %v195_v30 = vadd.f32 %v425_v28, %v194_v29 }
 0x120   :  { %v198_v31 = vmax.f32 %v195_v30, 0.0 }
 0x122   :  { %v199_v32 = vpack.c.bf16 %v198_v31, %v198_v31 }
 0x124   :  { %276 = vmatmul.bf16.vlgmr.msra.gmra.mxu2 %v199_v32 }
 0x125   :  { %v196_v33 = vpop.f32.mrf.mxu1 }
 0x1a7   :  { %v277_v35 = vpop.f32.mrf.mxu2 }
 0x1a8   :  { %v278_v36 = vadd.f32 %v426_v34, %v277_v35 }
 0x1aa   :  { %v281_v37 = vrot.slane %v278_v36, 4 }
 0x1ac   :  { %v282_v38 = vmax.f32 %v278_v36, %v281_v37 }
 0x1ae   :  { %v283_v39 = vrot.slane %v282_v38, 2 }
 0x1af   :  { %v279_v40 = vpop.f32.mrf.mxu2 }
 0x1b0   :  { %v284_v41 = vmax.f32 %v282_v38, %v283_v39 }
 0x1b2   :  { %v285_v42 = vrot.slane %v284_v41, 1 }
 0x1b4   :  { %v286_v43 = vmax.f32 %v284_v41, %v285_v42 }
 0x1b6   :  { %v287_v44 = vsub.f32 %v278_v36, %v286_v43 }
 0x1b8   :  { %v288_v45 = vmul.f32 1.442695, %v287_v44 }
 0x1ba   :  { %427 = vpow2.f32 %v288_v45 }
 0x1c0   :  { %v428_v46 = vpop.eup %427 }
 0x1c1   :  { %v290_v47 = vrot.slane %v428_v46, 4 }
 0x1c3   :  { %v291_v48 = vadd.f32 %v428_v46, %v290_v47 }
 0x1c5   :  { %v292_v49 = vrot.slane %v291_v48, 2 }
 0x1c7   :  { %v293_v50 = vadd.f32 %v292_v49, %v291_v48 }
 0x1c9   :  { %v294_v51 = vrot.slane %v293_v50, 1 }
 0x1cb   :  { %v295_v52 = vadd.f32 %v294_v51, %v293_v50 }
 0x1cd   :  { %429 = vrcp.f32 %v295_v52 }
 0x1d3   :  { %v430_v53 = vpop.eup %429 }
 0x1d4   :  { %v297_v54 = vmul.f32 %v430_v53, %v428_v46 }
 0x1d6   :  { %299 = vst.msk [vmem:[#allocation7] sm:$0xff] %vm298_vm1, %v297_v54 }
 0x1d7   :  { %310 = dma.vmem_to_hbm [thread:$0]  %s306_s6, 128, %s308_s11, [#allocation4]  }
 0x1d8   :  { %507 = dma.done.wait [#allocation4], 128  }
 0x1d9   :  { %508 = vsyncadd [#allocation4], 4294967168 }
 0x1da   :  { %315 = vsyncpa [#allocation3], 1 }
 0x1db   :  { %316 = vsyncpa [#allocation6], 1 }
 0x1dc   :  { %317 = vsyncpa [#allocation4], 1 }

</bundles_post_ra>
